<compile_context>
chip_gen: v6e
topology: v6e:2x2x1
jax: 0.10.0
libtpu: 0.0.40
codegen_flags: <defaults>
</compile_context>

<pallas_src>
import jax
import jax.numpy as jnp
from jax.experimental import pallas as pl
from jax.experimental.pallas import tpu as pltpu

_VMEM_LIMIT_BYTES = 48 * 1024 * 1024          # safe on v5e/v6e (128 MiB) and v7x (64 MiB)
_VMEM_BUDGET_BYTES = (_VMEM_LIMIT_BYTES * 3) // 4


def _ffn_kernel_fused(x_ref, w1_ref, b1_ref, w2_ref, b2_ref, o_ref):
    # x_ref:  (tm, d_model)        bf16
    # w1_ref: (d_model, d_ff) bf16, b1_ref: (1, d_ff)     f32
    # w2_ref: (d_ff, d_model) bf16, b2_ref: (1, d_model)  f32
    # o_ref:  (tm, d_model)        out dtype
    h = jnp.dot(x_ref[...], w1_ref[...], preferred_element_type=jnp.float32)
    h = jnp.maximum(h + b1_ref[...], 0.0)
    # dropout == identity (eval mode).
    y = jnp.dot(h.astype(w2_ref.dtype), w2_ref[...],
                preferred_element_type=jnp.float32)
    o_ref[...] = (y + b2_ref[...]).astype(o_ref.dtype)


def _ffn_kernel_tiled(x_ref, w1_ref, b1_ref, w2_ref, b2_ref, o_ref, acc_ref):
    # Same as above but d_ff is tiled along grid axis j; acc_ref accumulates
    # the second matmul's partial products in f32.
    j = pl.program_id(1)

    @pl.when(j == 0)
    def _():
        acc_ref[...] = jnp.zeros_like(acc_ref)

    h = jnp.dot(x_ref[...], w1_ref[...], preferred_element_type=jnp.float32)
    h = jnp.maximum(h + b1_ref[...], 0.0)
    # dropout == identity (eval mode).
    acc_ref[...] += jnp.dot(h.astype(w2_ref.dtype), w2_ref[...],
                            preferred_element_type=jnp.float32)

    @pl.when(j == pl.num_programs(1) - 1)
    def _():
        o_ref[...] = (acc_ref[...] + b2_ref[...]).astype(o_ref.dtype)


def _round_up(n: int, m: int) -> int:
    return ((n + m - 1) // m) * m


def _fused_vmem_bytes(tm, d_model, d_ff, out_itemsize):
    w = 2 * d_model * d_ff * 2                 # w1 + w2, bf16, single-buffered
    b = d_ff * 4 + d_model * 4                 # biases, f32, single-buffered
    x = 2 * tm * d_model * 2                   # x tile, bf16, double-buffered
    o = 2 * tm * d_model * out_itemsize        # out tile, double-buffered
    return w + b + x + o


def _tiled_vmem_bytes(tm, tf, d_model, out_itemsize):
    w = 2 * 2 * d_model * tf * 2               # w1/w2 tiles, bf16, double-buffered
    b = 2 * tf * 4 + d_model * 4               # b1 tile (dbl-buf) + b2 (single)
    x = 2 * tm * d_model * 2
    acc = tm * d_model * 4
    o = 2 * tm * d_model * out_itemsize
    return w + b + x + acc + o


def _pick_ff_tile(d_ff: int, tm: int, d_model: int, out_itemsize: int,
                  budget: int) -> int:
    """Largest multiple-of-128 divisor of d_ff whose tiled footprint fits."""
    candidates = [c for c in range(d_ff - (d_ff % 128), 0, -128) if d_ff % c == 0]
    for cand in candidates:
        if _tiled_vmem_bytes(tm, cand, d_model, out_itemsize) <= budget:
            return cand
    return candidates[-1] if candidates else d_ff


def positionwise_feed_forward(x, w1, b1, w2, b2, *, tm=256,
                              compute_dtype=jnp.bfloat16):
    """x: (batch, seq, d_model). Torch layout: w1 (d_ff, d_model), w2 (d_model, d_ff)."""
    batch, seq, d_model = x.shape
    d_ff = w1.shape[0]
    out_dtype = x.dtype
    out_itemsize = jnp.dtype(out_dtype).itemsize
    M = batch * seq

    # ---- M tiling -----------------------------------------------------------
    tm_eff = min(tm, _round_up(M, 8))          # keep sublane-aligned, fill MXU rows
    M_pad = _round_up(M, tm_eff)
    n_i = M_pad // tm_eff

    # ---- operand prep (bf16 MXU operands, f32 biases) -----------------------
    x2d = x.reshape(M, d_model)
    if M_pad != M:
        x2d = jnp.pad(x2d, ((0, M_pad - M), (0, 0)))
    x2d = x2d.astype(compute_dtype)
    w1_t = w1.T.astype(compute_dtype)          # (d_model, d_ff)
    w2_t = w2.T.astype(compute_dtype)          # (d_ff, d_model)
    b1_2d = b1.reshape(1, d_ff).astype(jnp.float32)
    b2_2d = b2.reshape(1, d_model).astype(jnp.float32)

    flops = 2 * M_pad * d_model * d_ff * 2     # two matmuls
    bytes_accessed = (
        x2d.size * x2d.dtype.itemsize
        + w1_t.size * w1_t.dtype.itemsize
        + w2_t.size * w2_t.dtype.itemsize
        + b1_2d.size * 4
        + b2_2d.size * 4
        + M_pad * d_model * out_itemsize
    )
    cost = pl.CostEstimate(flops=flops, transcendentals=0,
                           bytes_accessed=bytes_accessed)
    cparams = lambda sem: pltpu.CompilerParams(
        dimension_semantics=sem, vmem_limit_bytes=_VMEM_LIMIT_BYTES)

    def const_spec(shape):
        # Block index never changes over the grid -> single-buffered.
        return pl.BlockSpec(shape, lambda *idx: tuple(0 for _ in shape),
                            pipeline_mode=pl.Buffered(1))

    use_fused = _fused_vmem_bytes(tm_eff, d_model, d_ff,
                                  out_itemsize) <= _VMEM_BUDGET_BYTES

    if use_fused:
        # -------- fast path: whole weights resident, grid over M only --------
        out = pl.pallas_call(
            _ffn_kernel_fused,
            out_shape=jax.ShapeDtypeStruct((M_pad, d_model), out_dtype),
            grid_spec=pltpu.PrefetchScalarGridSpec(
                num_scalar_prefetch=0,
                grid=(n_i,),
                in_specs=[
                    pl.BlockSpec((tm_eff, d_model), lambda i: (i, 0)),   # x
                    const_spec((d_model, d_ff)),                         # W1^T
                    const_spec((1, d_ff)),                               # b1
                    const_spec((d_ff, d_model)),                         # W2^T
                    const_spec((1, d_model)),                            # b2
                ],
                out_specs=pl.BlockSpec((tm_eff, d_model), lambda i: (i, 0)),
            ),
            compiler_params=cparams(("parallel",)),
            cost_estimate=cost,
        )(x2d, w1_t, b1_2d, w2_t, b2_2d)
    else:
        # -------- tiled path: d_ff tiled with f32 accumulator ----------------
        tf = _pick_ff_tile(d_ff, tm_eff, d_model, out_itemsize,
                           _VMEM_BUDGET_BYTES)
        n_j = d_ff // tf
        out = pl.pallas_call(
            _ffn_kernel_tiled,
            out_shape=jax.ShapeDtypeStruct((M_pad, d_model), out_dtype),
            grid_spec=pltpu.PrefetchScalarGridSpec(
                num_scalar_prefetch=0,
                grid=(n_i, n_j),
                in_specs=[
                    pl.BlockSpec((tm_eff, d_model), lambda i, j: (i, 0)),  # x
                    pl.BlockSpec((d_model, tf), lambda i, j: (0, j)),      # W1^T
                    pl.BlockSpec((1, tf), lambda i, j: (0, j)),            # b1
                    pl.BlockSpec((tf, d_model), lambda i, j: (j, 0)),      # W2^T
                    const_spec((1, d_model)),                              # b2
                ],
                out_specs=pl.BlockSpec((tm_eff, d_model), lambda i, j: (i, 0)),
                scratch_shapes=[pltpu.VMEM((tm_eff, d_model), jnp.float32)],
            ),
            compiler_params=cparams(("parallel", "arbitrary")),
            cost_estimate=cost,
        )(x2d, w1_t, b1_2d, w2_t, b2_2d)

    return out[:M].reshape(batch, seq, d_model)


if __name__ == "__main__":
    # Small shapes consistent with the module: hidden_dim = 32 -> d_ff = 64.
    batch, seq, d_model = 2, 8, 32
    d_ff = d_model * 2

    key = jax.random.PRNGKey(0)
    kx, k1, k2, k3, k4 = jax.random.split(key, 5)

    x = jax.random.normal(kx, (batch, seq, d_model), dtype=jnp.float32)

    # Deterministic parameter init mimicking nn.Linear (uniform +/- 1/sqrt(fan_in)).
    bound1 = 1.0 / (d_model ** 0.5)
    bound2 = 1.0 / (d_ff ** 0.5)
    w1 = jax.random.uniform(k1, (d_ff, d_model), jnp.float32, -bound1, bound1)
    b1 = jax.random.uniform(k2, (d_ff,), jnp.float32, -bound1, bound1)
    w2 = jax.random.uniform(k3, (d_model, d_ff), jnp.float32, -bound2, bound2)
    b2 = jax.random.uniform(k4, (d_model,), jnp.float32, -bound2, bound2)

    y = positionwise_feed_forward(x, w1, b1, w2, b2)
    y = jax.block_until_ready(y)
    assert y.shape == (batch, seq, d_model)
    assert y.dtype == x.dtype

    # Reference with matching precision (bf16 MXU operands, f32 accumulation).
    xb = x.reshape(-1, d_model).astype(jnp.bfloat16)
    w1b = w1.astype(jnp.bfloat16)
    w2b = w2.astype(jnp.bfloat16)
    h_ref = jnp.maximum(
        jnp.dot(xb, w1b.T, preferred_element_type=jnp.float32) + b1, 0.0)
    y_ref = (jnp.dot(h_ref.astype(jnp.bfloat16), w2b.T,
                     preferred_element_type=jnp.float32) + b2)
    y_ref = y_ref.reshape(batch, seq, d_model)
    assert jnp.allclose(y, y_ref, atol=2e-3, rtol=2e-3), "mismatch vs bf16 reference"

    # Loose sanity check against the full-f32 PyTorch-equivalent math.
    y32 = jnp.maximum(x @ w1.T + b1, 0.0) @ w2.T + b2
    assert jnp.allclose(y, y32, atol=5e-2, rtol=5e-2), "mismatch vs f32 reference"

    print("KERNEL_OK")
</pallas_src>

<mosaic_0001>
module attributes {stable_mosaic.version = 11 : i64} {
  func.func @_ffn_kernel_fused(%arg0: i32, %arg1: memref<16x32xbf16, #tpu.memory_space<vmem>>, %arg2: memref<32x64xbf16, #tpu.memory_space<vmem>>, %arg3: memref<1x64xf32, #tpu.memory_space<vmem>>, %arg4: memref<64x32xbf16, #tpu.memory_space<vmem>>, %arg5: memref<1x32xf32, #tpu.memory_space<vmem>>, %arg6: memref<16x32xf32, #tpu.memory_space<vmem>>) attributes {dimension_semantics = [#tpu.dimension_semantics<parallel>], iteration_bounds = array<i64: 1>, scalar_prefetch = 0 : i64, scratch_operands = 0 : i64, tpu.core_type = #tpu.core_type<tc>, window_params = [{transform_indices = @transform_0, window_bounds = array<i64: 16, 32>}, {pipeline_mode = #tpu.pipeline_mode<synchronous>, transform_indices = @transform_1, window_bounds = array<i64: 32, 64>}, {pipeline_mode = #tpu.pipeline_mode<synchronous>, transform_indices = @transform_2, window_bounds = array<i64: 1, 64>}, {pipeline_mode = #tpu.pipeline_mode<synchronous>, transform_indices = @transform_3, window_bounds = array<i64: 64, 32>}, {pipeline_mode = #tpu.pipeline_mode<synchronous>, transform_indices = @transform_4, window_bounds = array<i64: 1, 32>}, {transform_indices = @transform_5, window_bounds = array<i64: 16, 32>}]} {
    %c0 = arith.constant 0 : index
    %c0_0 = arith.constant 0 : index
    %0 = vector.load %arg1[%c0, %c0_0] : memref<16x32xbf16, #tpu.memory_space<vmem>>, vector<16x32xbf16>
    %c0_1 = arith.constant 0 : index
    %c0_2 = arith.constant 0 : index
    %1 = vector.load %arg2[%c0_1, %c0_2] : memref<32x64xbf16, #tpu.memory_space<vmem>>, vector<32x64xbf16>
    %cst = arith.constant dense<0.000000e+00> : vector<16x64xf32>
    %2 = tpu.matmul %0, %1, %cst {dimension_numbers = #tpu.dot_dimension_numbers<[1], [0], [0], [1], [0, 0, 1, 1], [], []>} : vector<16x32xbf16>, vector<32x64xbf16>, vector<16x64xf32> -> vector<16x64xf32>
    %c0_3 = arith.constant 0 : index
    %c0_4 = arith.constant 0 : index
    %3 = vector.load %arg3[%c0_3, %c0_4] : memref<1x64xf32, #tpu.memory_space<vmem>>, vector<1x64xf32>
    %4 = vector.broadcast %3 : vector<1x64xf32> to vector<16x64xf32>
    %5 = arith.addf %2, %4 : vector<16x64xf32>
    %cst_5 = arith.constant 0.000000e+00 : f32
    %6 = vector.broadcast %cst_5 : f32 to vector<16x64xf32>
    %7 = arith.maximumf %5, %6 : vector<16x64xf32>
    %8 = arith.truncf %7 : vector<16x64xf32> to vector<16x64xbf16>
    %c0_6 = arith.constant 0 : index
    %c0_7 = arith.constant 0 : index
    %9 = vector.load %arg4[%c0_6, %c0_7] : memref<64x32xbf16, #tpu.memory_space<vmem>>, vector<64x32xbf16>
    %cst_8 = arith.constant dense<0.000000e+00> : vector<16x32xf32>
    %10 = tpu.matmul %8, %9, %cst_8 {dimension_numbers = #tpu.dot_dimension_numbers<[1], [0], [0], [1], [0, 0, 1, 1], [], []>} : vector<16x64xbf16>, vector<64x32xbf16>, vector<16x32xf32> -> vector<16x32xf32>
    %c0_9 = arith.constant 0 : index
    %c0_10 = arith.constant 0 : index
    %11 = vector.load %arg5[%c0_9, %c0_10] : memref<1x32xf32, #tpu.memory_space<vmem>>, vector<1x32xf32>
    %12 = vector.broadcast %11 : vector<1x32xf32> to vector<16x32xf32>
    %13 = arith.addf %10, %12 : vector<16x32xf32>
    %c0_11 = arith.constant 0 : index
    %c0_12 = arith.constant 0 : index
    %14 = vector.load %arg6[%c0_11, %c0_12] : memref<16x32xf32, #tpu.memory_space<vmem>>, vector<16x32xf32>
    tpu.vector_store %arg6[%c0_11, %c0_12], %13 {strides = array<i32>} : memref<16x32xf32, #tpu.memory_space<vmem>>, vector<16x32xf32>,
    return
  }
  func.func @transform_0(%arg0: i32) -> (i32, i32) {
    %c0_i32 = arith.constant 0 : i32
    %c0_i32_0 = arith.constant 0 : i32
    return %arg0, %c0_i32 : i32, i32
  }
  func.func @transform_1(%arg0: i32) -> (i32, i32) {
    %c0_i32 = arith.constant 0 : i32
    %c0_i32_0 = arith.constant 0 : i32
    %c0_i32_1 = arith.constant 0 : i32
    return %c0_i32, %c0_i32_0 : i32, i32
  }
  func.func @transform_2(%arg0: i32) -> (i32, i32) {
    %c0_i32 = arith.constant 0 : i32
    %c0_i32_0 = arith.constant 0 : i32
    %c0_i32_1 = arith.constant 0 : i32
    return %c0_i32, %c0_i32_0 : i32, i32
  }
  func.func @transform_3(%arg0: i32) -> (i32, i32) {
    %c0_i32 = arith.constant 0 : i32
    %c0_i32_0 = arith.constant 0 : i32
    %c0_i32_1 = arith.constant 0 : i32
    return %c0_i32, %c0_i32_0 : i32, i32
  }
  func.func @transform_4(%arg0: i32) -> (i32, i32) {
    %c0_i32 = arith.constant 0 : i32
    %c0_i32_0 = arith.constant 0 : i32
    %c0_i32_1 = arith.constant 0 : i32
    return %c0_i32, %c0_i32_0 : i32, i32
  }
  func.func @transform_5(%arg0: i32) -> (i32, i32) {
    %c0_i32 = arith.constant 0 : i32
    %c0_i32_0 = arith.constant 0 : i32
    return %arg0, %c0_i32 : i32, i32
  }
}

</mosaic_0001>

<bundles_post_ra>
// kernel: tpu_custom_call.1
= control target key start
LH: loop header
LB: loop body
LE: loop exit
PB: predicated region body
PF: predicated region fallthrough
CT: control target
= control target key end

     0   :  { %v275_v1 = vmov 0.0   ;;  %vm276_vm0 = vmmov 0   ;;  %vm52_vm1 = vcmask 261120   ;;  %s343_s0 = inlined_call_operand.vmem [shape: bf16[16,32], index: 0, kind: input, shape index: {}]   ;;  %s344_s1 = inlined_call_operand.vmem [shape: bf16[32,64], index: 1, kind: input, shape index: {}]   ;;  %s345_s2 = inlined_call_operand.vmem [shape: f32[1,64], index: 2, kind: input, shape index: {}]   ;;  %s346_s3 = inlined_call_operand.vmem [shape: bf16[64,32], index: 3, kind: input, shape index: {}]   ;;  %s347_s4 = inlined_call_operand.vmem [shape: f32[1,32], index: 4, kind: input, shape index: {}]   ;;  %s348_s5 = inlined_call_operand.hbm [shape: f32[16,32], index: 5, kind: output, shape index: {}]  }
   0x1   :  { %v246_v0 = vld [vmem:[%s344_s1 + $0x8] sm:$0xff]   ;;  %221 = vmatprep.subr.bf16.mxu0 %v275_v1  ;;  %229 = vmatprep.subr.bf16.mxu1 %v275_v1  ;;  %v247_v2 = vld [vmem:[%s344_s1] sm:$0xff]   ;;  %v249_v3 = vld [vmem:[%s346_s3 + $0x18] sm:$0xff]  }
   0x2   :  { %222 = vmatpush3.bf16.msra.mxu0 %v246_v0  ;;  %225 = vmatprep.mubr.msk.bf16.mxu0 %vm276_vm0, %v275_v1  ;;  %v248_v4 = vld [vmem:[%s343_s0] sm:$0xff]  }
   0x3   :  { %223 = vmatprep.subr.bf16.mxu0 %v275_v1  ;;  %237 = vmatprep.mubr.msk.bf16.mxu1 %vm276_vm0, %v275_v1 }
   0x4   :  { %230 = vmatpush3.bf16.msra.mxu1 %v249_v3 }
   0x5   :  { %231 = vmatprep.subr.bf16.mxu1 %v275_v1 }
   0x6   :  { %224 = vmatpush3.bf16.msra.mxu0 %v247_v2 }
   0x7   :  { %10 = vsyncpa [#allocation3], 0  ;;  %v250_v5 = vld [vmem:[%s346_s3 + $0x10] sm:$0xff]   ;;  %v251_v6 = vld [vmem:[%s346_s3 + $0x8] sm:$0xff]   ;;  %vm139_vm2 = vcmask 523264  }
   0x8   :  { %232 = vmatpush3.bf16.msra.mxu1 %v250_v5  ;;  %v252_v7 = vld [vmem:[%s346_s3] sm:$0xff]   ;;  %s277_s3 = smov [#allocation2]  }
   0x9   :  { %226 = vmatmul.mubr.msk.bf16.vlgmr.msra.gmra.mxu0 %vm52_vm1, %v248_v4  ;;  %233 = vmatprep.subr.bf16.mxu1 %v275_v1  ;;  %v202_v8 = vld [vmem:[%s345_s2] ss:$0 sm:$0xff]  ;;  %s191_s9 = sshll.u32 %s277_s3, 4  ;;  %s192_s9 = int_to_ptr.vmem [resolvable:$true] %s191_s9 }
   0xa   :  { %v207_v18 = vld [vmem:[%s347_s4] ss:$0 sm:$0xff]  ;;  %s253_s2 = scalar_lea.vmem %s192_s9, 256  ;;  %p258_p1 = scmp.lt.s32.totalorder %s192_s9, %s192_s9 }
   0xb   :  { %p254_p0 = scmp.ne.s32.totalorder %s192_s9, %s253_s2  ;;  %p259_p2 = scmp.lt.s32.totalorder %s253_s2, %s253_s2 }
   0xc   :  { %234 = vmatpush3.bf16.msra.mxu1 %v251_v6 }
   0xd   :  { %235 = vmatprep.subr.bf16.mxu1 %v275_v1  ;;  %p260_p3 = por %p259_p2, %p258_p1 }
   0xf   :  { %p261_p4 = pnand %p260_p3, %p254_p0 }
  0x10   :  { %236 = vmatpush3.bf16.msra.mxu1 %v252_v7 }
  0xc9   :  { %v90_v9 = vpop.f32.mrf.mxu0 }
  0xca   :  { %v91_v11 = vadd.f32 %v202_v8, %v90_v9 }
  0xcb   :  { %v227_v10 = vpop.f32.mrf.mxu0 }
  0xcc   :  { %v97_v15 = vmax.f32 %v91_v11, 0.0 }
  0xcd   :  { %v93_v12 = vpop.f32.mrf.mxu0 }
  0xce   :  { %v94_v13 = vadd.f32 %v202_v8, %v93_v12 }
  0xcf   :  { %v228_v14 = vpop.f32.mrf.mxu0 }
  0xd0   :  { %v98_v16 = vmax.f32 %v94_v13, 0.0 }
  0xd2   :  { %v99_v17 = vpack.c.bf16 %v98_v16, %v97_v15 }
  0xd4   :  { %238 = vmatmul.mubr.msk.bf16.vlgmr.msra.gmra.mxu1 %vm139_vm2, %v99_v17 }
 0x194   :  { %v177_v19 = vpop.f32.mrf.mxu1 }
 0x195   :  { %v178_v20 = vadd.f32 %v207_v18, %v177_v19 }
 0x196   :  { %v239_v21 = vpop.f32.mrf.mxu1 }
 0x197   :  { %184 = vst.msk [vmem:[#allocation2] sm:$0xff] %vm52_vm1, %v178_v20 }
 0x198   :  { %v180_v22 = vpop.f32.mrf.mxu1 }
 0x199   :  { %v181_v23 = vadd.f32 %v207_v18, %v180_v22 }
 0x19a   :  { %v240_v24 = vpop.f32.mrf.mxu1 }
 0x19b   :  { %185 = vst.msk [vmem:[#allocation2 + $0x8] sm:$0xff] %vm52_vm1, %v181_v23 }
 0x19c   :  { %264 = shalt.err (!%p261_p4)
}
 0x19d   :  { %s278_s4 = smov 128   ;;  %s279_s10 = smov 8  }
 0x19e   :  { %197 = dma.vmem_to_hbm [thread:$0]  %s192_s9, 256, %s348_s5, [#allocation3], %s278_s4, %s278_s4, %s279_s10  }
 0x19f   :  { %273 = dma.done.wait [#allocation3], 256  }
 0x1a0   :  { %274 = vsyncadd [#allocation3], 4294967040 }
 0x1a1   :  { %201 = vsyncpa [#allocation3], 1 }

</bundles_post_ra>
